<compile_context>
chip_gen: v6e
topology: v6e:2x2x1
jax: 0.10.0
libtpu: 0.0.40
codegen_flags: <defaults>
</compile_context>

<pallas_src>
import math

import jax
import jax.numpy as jnp
from jax.experimental import pallas as pl
from jax.experimental.pallas import tpu as pltpu

BN_EPS = 1e-5
_LANE = 128


def _round_up(x, m):
    return ((x + m - 1) // m) * m


def _pad2(a, rows, cols):
    return jnp.pad(a, ((0, rows - a.shape[0]), (0, cols - a.shape[1])))


# ---------------------------------------------------------------------------
# Generation-aware tiling
# ---------------------------------------------------------------------------

def _hw_config():
    """VMEM-capacity-gated tile targets & scoped-vmem limit."""
    try:
        vmem_cap = int(pltpu.get_tpu_info().vmem_capacity_bytes)
    except Exception:
        vmem_cap = 64 * 1024 * 1024          # conservative (v7x-like) default
    if vmem_cap >= 96 * 1024 * 1024:         # v5e / v6e (128 MiB per core)
        return {"tm": 4096, "tk": 2048,
                "vmem_limit": 96 * 1024 * 1024, "two_core": False}
    # v7x (64 MiB per core, 2 TCs per chip) or unknown
    return {"tm": 2048, "tk": 1024,
            "vmem_limit": 40 * 1024 * 1024, "two_core": True}


def _vmem_estimate(tm, tk, fpad):
    """Rough VMEM bytes for the fused spmm kernel (double-buffered ins/outs + acc)."""
    return (2 * tm * tk * 2            # adj tile, bf16
            + 2 * tk * fpad * 2        # support tile, bf16
            + 2 * tm * fpad * 4        # selfshift tile, f32
            + 2 * fpad * (2 * fpad) * 2  # wcat_next, bf16
            + 2 * (tm * fpad * 2 + tm * fpad * 4)  # sup_next + ss_next outputs
            + tm * fpad * 4)           # f32 accumulator


def _choose_tiling(n, fpad):
    cfg = _hw_config()
    tm_t, tk_t, vmem_limit = cfg["tm"], cfg["tk"], cfg["vmem_limit"]

    if n <= tm_t:
        npad = _round_up(n, _LANE)
        tm = tk = npad
        # v7x: give the 'parallel' row axis >=2 grid steps for medium graphs so
        # both TensorCores get work (negligible cost on 1-TC parts).
        if cfg["two_core"] and npad >= 1024:
            npad = _round_up(n, 256)
            tm = npad // 2
            tk = tm
    else:
        tm, tk = tm_t, tk_t
        npad = _round_up(n, tm)        # tk divides tm divides npad

    # Shrink tiles if the feature width makes the fused kernel exceed the budget.
    while _vmem_estimate(tm, tk, fpad) > int(0.7 * vmem_limit) and max(tm, tk) > 256:
        if tk >= tm and tk > 256:
            tk //= 2
        elif tm > 256:
            tm //= 2
        else:
            break

    return npad, tm, tk, vmem_limit


# ---------------------------------------------------------------------------
# Kernels
# ---------------------------------------------------------------------------

def _proj_kernel(x_ref, wcat_ref, shift_ref, sup_ref, ss_ref):
    """proj = x @ [W'|Ws']; sup = proj[:, :F] (bf16); selfshift = proj[:, F:] + shift."""
    proj = jnp.dot(x_ref[...].astype(jnp.bfloat16), wcat_ref[...],
                   preferred_element_type=jnp.float32)
    f = sup_ref.shape[-1]
    sup_ref[...] = proj[:, :f].astype(sup_ref.dtype)
    ss_ref[...] = proj[:, f:] + shift_ref[...]


def _spmm_fused_kernel(adj_ref, sup_ref, ss_ref, wcat_ref, shift_ref,
                       sup_next_ref, ss_next_ref, acc_ref):
    """acc += adj(i,k) @ sup(k); finalize: h = relu(acc + ss); next-layer projection."""
    k = pl.program_id(1)

    @pl.when(k == 0)
    def _():
        acc_ref[...] = jnp.zeros_like(acc_ref)

    acc_ref[...] += jnp.dot(adj_ref[...], sup_ref[...],
                            preferred_element_type=jnp.float32)

    @pl.when(k == pl.num_programs(1) - 1)
    def _():
        h = jnp.maximum(acc_ref[...] + ss_ref[...], 0.0)
        proj = jnp.dot(h.astype(jnp.bfloat16), wcat_ref[...],
                       preferred_element_type=jnp.float32)
        f = sup_next_ref.shape[-1]
        sup_next_ref[...] = proj[:, :f].astype(sup_next_ref.dtype)
        ss_next_ref[...] = proj[:, f:] + shift_ref[...]


def _spmm_final_kernel(adj_ref, sup_ref, ss_ref, res_ref, o_ref, acc_ref):
    """Last layer: acc += adj @ sup; finalize: out = relu(acc + ss) + x (residual)."""
    k = pl.program_id(1)

    @pl.when(k == 0)
    def _():
        acc_ref[...] = jnp.zeros_like(acc_ref)

    acc_ref[...] += jnp.dot(adj_ref[...], sup_ref[...],
                            preferred_element_type=jnp.float32)

    @pl.when(k == pl.num_programs(1) - 1)
    def _():
        o_ref[...] = (jnp.maximum(acc_ref[...] + ss_ref[...], 0.0)
                      + res_ref[...]).astype(o_ref.dtype)


# ---------------------------------------------------------------------------
# pallas_call wrappers
# ---------------------------------------------------------------------------

def _project(x_p, wcat, shift, tm, fpad, vmem_limit):
    npad, fin_pad = x_p.shape
    grid = (npad // tm,)
    return pl.pallas_call(
        _proj_kernel,
        grid_spec=pltpu.PrefetchScalarGridSpec(
            num_scalar_prefetch=0,
            grid=grid,
            in_specs=[
                pl.BlockSpec((tm, fin_pad), lambda i: (i, 0)),
                pl.BlockSpec((fin_pad, 2 * fpad), lambda i: (0, 0)),
                pl.BlockSpec((1, fpad), lambda i: (0, 0)),
            ],
            out_specs=(
                pl.BlockSpec((tm, fpad), lambda i: (i, 0)),
                pl.BlockSpec((tm, fpad), lambda i: (i, 0)),
            ),
        ),
        out_shape=(jax.ShapeDtypeStruct((npad, fpad), jnp.bfloat16),
                   jax.ShapeDtypeStruct((npad, fpad), jnp.float32)),
        compiler_params=pltpu.CompilerParams(
            dimension_semantics=("parallel",),
            vmem_limit_bytes=vmem_limit),
    )(x_p, wcat, shift)


def _spmm_fused(adj_p, sup, ss, wcat_next, shift_next, tm, tk, fpad, vmem_limit):
    npad = adj_p.shape[0]
    grid = (npad // tm, npad // tk)
    return pl.pallas_call(
        _spmm_fused_kernel,
        grid_spec=pltpu.PrefetchScalarGridSpec(
            num_scalar_prefetch=0,
            grid=grid,
            in_specs=[
                pl.BlockSpec((tm, tk), lambda i, k: (i, k)),        # adjacency tile
                pl.BlockSpec((tk, fpad), lambda i, k: (k, 0)),      # support rows k
                pl.BlockSpec((tm, fpad), lambda i, k: (i, 0)),      # selfshift rows i
                pl.BlockSpec((fpad, 2 * fpad), lambda i, k: (0, 0)),  # next-layer W'|Ws'
                pl.BlockSpec((1, fpad), lambda i, k: (0, 0)),       # next-layer shift
            ],
            out_specs=(
                pl.BlockSpec((tm, fpad), lambda i, k: (i, 0)),      # sup_{l+1}
                pl.BlockSpec((tm, fpad), lambda i, k: (i, 0)),      # selfshift_{l+1}
            ),
            scratch_shapes=[pltpu.VMEM((tm, fpad), jnp.float32)],
        ),
        out_shape=(jax.ShapeDtypeStruct((npad, fpad), jnp.bfloat16),
                   jax.ShapeDtypeStruct((npad, fpad), jnp.float32)),
        compiler_params=pltpu.CompilerParams(
            dimension_semantics=("parallel", "arbitrary"),
            vmem_limit_bytes=vmem_limit),
    )(adj_p, sup, ss, wcat_next, shift_next)


def _spmm_final(adj_p, sup, ss, residual, tm, tk, fpad, vmem_limit):
    npad = adj_p.shape[0]
    grid = (npad // tm, npad // tk)
    return pl.pallas_call(
        _spmm_final_kernel,
        grid_spec=pltpu.PrefetchScalarGridSpec(
            num_scalar_prefetch=0,
            grid=grid,
            in_specs=[
                pl.BlockSpec((tm, tk), lambda i, k: (i, k)),
                pl.BlockSpec((tk, fpad), lambda i, k: (k, 0)),
                pl.BlockSpec((tm, fpad), lambda i, k: (i, 0)),
                pl.BlockSpec((tm, fpad), lambda i, k: (i, 0)),      # residual x rows i
            ],
            out_specs=pl.BlockSpec((tm, fpad), lambda i, k: (i, 0)),
            scratch_shapes=[pltpu.VMEM((tm, fpad), jnp.float32)],
        ),
        out_shape=jax.ShapeDtypeStruct((npad, fpad), jnp.float32),
        compiler_params=pltpu.CompilerParams(
            dimension_semantics=("parallel", "arbitrary"),
            vmem_limit_bytes=vmem_limit),
    )(adj_p, sup, ss, residual)


# ---------------------------------------------------------------------------
# Forward wrapper
# ---------------------------------------------------------------------------

def _fold_bn(params, eps=BN_EPS):
    """Fold eval-mode BatchNorm1d + bias into the projection weights."""
    scale = params["bn_gamma"] * jax.lax.rsqrt(params["bn_rvar"] + eps)   # (1, F)
    w = params["weight"] * scale
    ws = params["self_weight"] * scale
    shift = (params["bias"] - params["bn_rmean"]) * scale + params["bn_beta"]
    return w, ws, shift


def resgcn_block_forward(adj, x, layers_params):
    """ResGCNBlock.forward == GraphBaseBlock(aggrmethod='add', dense=False), eval mode."""
    n, fin = x.shape
    hidden = layers_params[0]["weight"].shape[1]
    if fin != hidden:
        raise RuntimeError(
            "The dimension of in_features and hiddendim should be matched in add model.")

    fpad = _round_up(hidden, _LANE)
    npad, tm, tk, vmem_limit = _choose_tiling(n, fpad)

    # Cast adjacency to bf16 BEFORE padding (half the bytes through the pad pass).
    adj_p = _pad2(adj.astype(jnp.bfloat16), npad, npad)
    x_p = _pad2(x.astype(jnp.float32), npad, fpad)        # layer-0 input + residual

    # Fold BN/bias and build padded [W'|Ws'] per layer (runs once under jit).
    folded = []
    for p in layers_params:
        w, ws, shift = _fold_bn(p)
        wcat = jnp.concatenate([_pad2(w, fpad, fpad),
                                _pad2(ws, fpad, fpad)], axis=1).astype(jnp.bfloat16)
        folded.append((wcat, _pad2(shift, 1, fpad)))

    # Layer-0 projection: sup = x@W', selfshift = x@Ws' + shift.
    sup, ss = _project(x_p, folded[0][0], folded[0][1], tm, fpad, vmem_limit)

    out = None
    num_layers = len(layers_params)
    for li in range(num_layers):
        if li == num_layers - 1:
            # Last layer: spmm + relu + residual (h + x) fused into the finalize.
            out = _spmm_final(adj_p, sup, ss, x_p, tm, tk, fpad, vmem_limit)
        else:
            # Inner layer: spmm + relu + NEXT layer projection fused -> h never
            # round-trips through HBM.
            sup, ss = _spmm_fused(adj_p, sup, ss,
                                  folded[li + 1][0], folded[li + 1][1],
                                  tm, tk, fpad, vmem_limit)
        # TODO(synk): F.dropout skipped — eval-mode forward (training=False) -> identity.
        # TODO(synk): BN folding is eval-mode only; training-mode batch stats not implemented.

    return out[:n, :hidden]


# ---------------------------------------------------------------------------
# Params / reference / test harness
# ---------------------------------------------------------------------------

def init_gcn_layer_params(key, in_features, out_features):
    """Mirror GraphConvolutionBS.reset_parameters (uniform(-stdv, stdv))."""
    stdv = 1.0 / math.sqrt(out_features)
    k_w, k_ws, k_b = jax.random.split(key, 3)
    return {
        "weight": jax.random.uniform(k_w, (in_features, out_features),
                                     minval=-stdv, maxval=stdv, dtype=jnp.float32),
        "self_weight": jax.random.uniform(k_ws, (in_features, out_features),
                                          minval=-stdv, maxval=stdv, dtype=jnp.float32),
        "bias": jax.random.uniform(k_b, (1, out_features),
                                   minval=-stdv, maxval=stdv, dtype=jnp.float32),
        # BatchNorm1d defaults: gamma=1, beta=0, running_mean=0, running_var=1
        "bn_gamma": jnp.ones((1, out_features), jnp.float32),
        "bn_beta": jnp.zeros((1, out_features), jnp.float32),
        "bn_rmean": jnp.zeros((1, out_features), jnp.float32),
        "bn_rvar": jnp.ones((1, out_features), jnp.float32),
    }


def reference_forward(adj, x, layers_params):
    """Pure-JAX f32 reference of the eval-mode ResGCNBlock forward."""
    h = x
    for p in layers_params:
        support = h @ p["weight"]
        out = adj @ support + h @ p["self_weight"] + p["bias"]
        out = (out - p["bn_rmean"]) * jax.lax.rsqrt(p["bn_rvar"] + BN_EPS) \
              * p["bn_gamma"] + p["bn_beta"]
        h = jnp.maximum(out, 0.0)
    return h + x


def build_normalized_adjacency(key, n):
    """Deterministic random symmetric adjacency with self loops, row-normalized."""
    a = (jax.random.uniform(key, (n, n)) < 0.3).astype(jnp.float32)
    a = jnp.maximum(a, a.T)
    a = a + jnp.eye(n, dtype=jnp.float32)
    deg = jnp.sum(a, axis=1, keepdims=True)
    return a / deg


if __name__ == "__main__":
    # ResGCNBlock uses aggrmethod='add' -> in_features must equal hidden.
    N = 16
    IN_FEATURES = 32
    HIDDEN = 32
    NBASELAYER = 2

    root = jax.random.PRNGKey(0)
    k_adj, k_x, k_l0, k_l1 = jax.random.split(root, 4)

    adj = build_normalized_adjacency(k_adj, N)                        # (16, 16)
    x = jax.random.normal(k_x, (N, IN_FEATURES), dtype=jnp.float32)   # (16, 32)

    layers_params = [
        init_gcn_layer_params(k_l0, IN_FEATURES, HIDDEN),   # layer 0: in -> hidden
        init_gcn_layer_params(k_l1, HIDDEN, HIDDEN),        # layer 1: hidden -> hidden
    ]

    fwd = jax.jit(resgcn_block_forward)
    out = jax.block_until_ready(fwd(adj, x, layers_params))

    ref = reference_forward(adj, x, layers_params)

    assert out.shape == (N, HIDDEN), out.shape
    assert out.dtype == jnp.float32
    assert bool(jnp.all(jnp.isfinite(out)))
    # bf16 MXU operands with f32 accumulation -> loose tolerance vs. f32 reference.
    assert bool(jnp.allclose(out, ref, atol=5e-2, rtol=5e-2)), \
        float(jnp.max(jnp.abs(out - ref)))
    print("KERNEL_OK")
</pallas_src>

<mosaic_0001>
module attributes {stable_mosaic.version = 11 : i64} {
  func.func @_spmm_final_kernel(%arg0: i32, %arg1: i32, %arg2: memref<128x128xbf16, #tpu.memory_space<vmem>>, %arg3: memref<128x128xbf16, #tpu.memory_space<vmem>>, %arg4: memref<128x128xf32, #tpu.memory_space<vmem>>, %arg5: memref<128x128xf32, #tpu.memory_space<vmem>>, %arg6: memref<128x128xf32, #tpu.memory_space<vmem>>, %arg7: memref<128x128xf32, #tpu.memory_space<vmem>>) attributes {dimension_semantics = [#tpu.dimension_semantics<parallel>, #tpu.dimension_semantics<arbitrary>], iteration_bounds = array<i64: 1, 1>, scalar_prefetch = 0 : i64, scratch_operands = 1 : i64, tpu.core_type = #tpu.core_type<tc>, window_params = [{transform_indices = @transform_0, window_bounds = array<i64: 128, 128>}, {transform_indices = @transform_1, window_bounds = array<i64: 128, 128>}, {transform_indices = @transform_2, window_bounds = array<i64: 128, 128>}, {transform_indices = @transform_3, window_bounds = array<i64: 128, 128>}, {transform_indices = @transform_4, window_bounds = array<i64: 128, 128>}]} {
    %c0_i32 = arith.constant 0 : i32
    %0 = arith.cmpi eq, %arg1, %c0_i32 : i32
    %1 = arith.extui %0 : i1 to i32
    %c0_i32_0 = arith.constant 0 : i32
    %2 = arith.cmpi ne, %1, %c0_i32_0 : i32
    scf.if %2 {
      %cst_10 = arith.constant 0.000000e+00 : f32
      %12 = vector.broadcast %cst_10 : f32 to vector<128x128xf32>
      %c0_11 = arith.constant 0 : index
      %c0_12 = arith.constant 0 : index
      %13 = vector.load %arg7[%c0_11, %c0_12] : memref<128x128xf32, #tpu.memory_space<vmem>>, vector<128x128xf32>
      tpu.vector_store %arg7[%c0_11, %c0_12], %12 {strides = array<i32>} : memref<128x128xf32, #tpu.memory_space<vmem>>, vector<128x128xf32>,
    } else {
    }
    %c0 = arith.constant 0 : index
    %c0_1 = arith.constant 0 : index
    %3 = vector.load %arg7[%c0, %c0_1] : memref<128x128xf32, #tpu.memory_space<vmem>>, vector<128x128xf32>
    %c0_2 = arith.constant 0 : index
    %c0_3 = arith.constant 0 : index
    %4 = vector.load %arg2[%c0_2, %c0_3] : memref<128x128xbf16, #tpu.memory_space<vmem>>, vector<128x128xbf16>
    %c0_4 = arith.constant 0 : index
    %c0_5 = arith.constant 0 : index
    %5 = vector.load %arg3[%c0_4, %c0_5] : memref<128x128xbf16, #tpu.memory_space<vmem>>, vector<128x128xbf16>
    %cst = arith.constant dense<0.000000e+00> : vector<128x128xf32>
    %6 = tpu.matmul %4, %5, %cst {dimension_numbers = #tpu.dot_dimension_numbers<[1], [0], [0], [1], [0, 0, 1, 1], [], []>} : vector<128x128xbf16>, vector<128x128xbf16>, vector<128x128xf32> -> vector<128x128xf32>
    %7 = arith.addf %3, %6 : vector<128x128xf32>
    %c0_6 = arith.constant 0 : index
    %c0_7 = arith.constant 0 : index
    %8 = vector.load %arg7[%c0_6, %c0_7] : memref<128x128xf32, #tpu.memory_space<vmem>>, vector<128x128xf32>
    tpu.vector_store %arg7[%c0_6, %c0_7], %7 {strides = array<i32>} : memref<128x128xf32, #tpu.memory_space<vmem>>, vector<128x128xf32>,
    %c0_i32_8 = arith.constant 0 : i32
    %9 = arith.cmpi eq, %arg1, %c0_i32_8 : i32
    %10 = arith.extui %9 : i1 to i32
    %c0_i32_9 = arith.constant 0 : i32
    %11 = arith.cmpi ne, %10, %c0_i32_9 : i32
    scf.if %11 {
      %c0_10 = arith.constant 0 : index
      %c0_11 = arith.constant 0 : index
      %12 = vector.load %arg7[%c0_10, %c0_11] : memref<128x128xf32, #tpu.memory_space<vmem>>, vector<128x128xf32>
      %c0_12 = arith.constant 0 : index
      %c0_13 = arith.constant 0 : index
      %13 = vector.load %arg4[%c0_12, %c0_13] : memref<128x128xf32, #tpu.memory_space<vmem>>, vector<128x128xf32>
      %14 = arith.addf %12, %13 : vector<128x128xf32>
      %cst_14 = arith.constant 0.000000e+00 : f32
      %15 = vector.broadcast %cst_14 : f32 to vector<128x128xf32>
      %16 = arith.maximumf %14, %15 : vector<128x128xf32>
      %c0_15 = arith.constant 0 : index
      %c0_16 = arith.constant 0 : index
      %17 = vector.load %arg5[%c0_15, %c0_16] : memref<128x128xf32, #tpu.memory_space<vmem>>, vector<128x128xf32>
      %18 = arith.addf %16, %17 : vector<128x128xf32>
      %c0_17 = arith.constant 0 : index
      %c0_18 = arith.constant 0 : index
      %19 = vector.load %arg6[%c0_17, %c0_18] : memref<128x128xf32, #tpu.memory_space<vmem>>, vector<128x128xf32>
      tpu.vector_store %arg6[%c0_17, %c0_18], %18 {strides = array<i32>} : memref<128x128xf32, #tpu.memory_space<vmem>>, vector<128x128xf32>,
    } else {
    }
    return
  }
  func.func @transform_0(%arg0: i32, %arg1: i32) -> (i32, i32) {
    %c0_i32 = arith.constant 0 : i32
    return %arg0, %arg1 : i32, i32
  }
  func.func @transform_1(%arg0: i32, %arg1: i32) -> (i32, i32) {
    %c0_i32 = arith.constant 0 : i32
    %c0_i32_0 = arith.constant 0 : i32
    return %arg1, %c0_i32 : i32, i32
  }
  func.func @transform_2(%arg0: i32, %arg1: i32) -> (i32, i32) {
    %c0_i32 = arith.constant 0 : i32
    %c0_i32_0 = arith.constant 0 : i32
    return %arg0, %c0_i32 : i32, i32
  }
  func.func @transform_3(%arg0: i32, %arg1: i32) -> (i32, i32) {
    %c0_i32 = arith.constant 0 : i32
    %c0_i32_0 = arith.constant 0 : i32
    return %arg0, %c0_i32 : i32, i32
  }
  func.func @transform_4(%arg0: i32, %arg1: i32) -> (i32, i32) {
    %c0_i32 = arith.constant 0 : i32
    %c0_i32_0 = arith.constant 0 : i32
    return %arg0, %c0_i32 : i32, i32
  }
}

module attributes {stable_mosaic.version = 11 : i64} {
  func.func @_proj_kernel(%arg0: i32, %arg1: memref<128x128xf32, #tpu.memory_space<vmem>>, %arg2: memref<128x256xbf16, #tpu.memory_space<vmem>>, %arg3: memref<1x128xf32, #tpu.memory_space<vmem>>, %arg4: memref<128x128xbf16, #tpu.memory_space<vmem>>, %arg5: memref<128x128xf32, #tpu.memory_space<vmem>>) attributes {dimension_semantics = [#tpu.dimension_semantics<parallel>], iteration_bounds = array<i64: 1>, scalar_prefetch = 0 : i64, scratch_operands = 0 : i64, tpu.core_type = #tpu.core_type<tc>, window_params = [{transform_indices = @transform_0, window_bounds = array<i64: 128, 128>}, {pipeline_mode = #tpu.pipeline_mode<synchronous>, transform_indices = @transform_1, window_bounds = array<i64: 128, 256>}, {pipeline_mode = #tpu.pipeline_mode<synchronous>, transform_indices = @transform_2, window_bounds = array<i64: 1, 128>}, {transform_indices = @transform_3, window_bounds = array<i64: 128, 128>}, {transform_indices = @transform_4, window_bounds = array<i64: 128, 128>}]} {
    %c0 = arith.constant 0 : index
    %c0_0 = arith.constant 0 : index
    %0 = vector.load %arg1[%c0, %c0_0] : memref<128x128xf32, #tpu.memory_space<vmem>>, vector<128x128xf32>
    %1 = arith.truncf %0 : vector<128x128xf32> to vector<128x128xbf16>
    %c0_1 = arith.constant 0 : index
    %c0_2 = arith.constant 0 : index
    %2 = vector.load %arg2[%c0_1, %c0_2] : memref<128x256xbf16, #tpu.memory_space<vmem>>, vector<128x256xbf16>
    %cst = arith.constant dense<0.000000e+00> : vector<128x256xf32>
    %3 = tpu.matmul %1, %2, %cst {dimension_numbers = #tpu.dot_dimension_numbers<[1], [0], [0], [1], [0, 0, 1, 1], [], []>} : vector<128x128xbf16>, vector<128x256xbf16>, vector<128x256xf32> -> vector<128x256xf32>
    %4 = vector.extract_strided_slice %3 {offsets = [0, 0], sizes = [128, 128], strides = [1, 1]} : vector<128x256xf32> to vector<128x128xf32>
    %5 = arith.truncf %4 : vector<128x128xf32> to vector<128x128xbf16>
    %c0_3 = arith.constant 0 : index
    %c0_4 = arith.constant 0 : index
    %6 = vector.load %arg4[%c0_3, %c0_4] : memref<128x128xbf16, #tpu.memory_space<vmem>>, vector<128x128xbf16>
    tpu.vector_store %arg4[%c0_3, %c0_4], %5 {strides = array<i32>} : memref<128x128xbf16, #tpu.memory_space<vmem>>, vector<128x128xbf16>,
    %7 = vector.extract_strided_slice %3 {offsets = [0, 128], sizes = [128, 128], strides = [1, 1]} : vector<128x256xf32> to vector<128x128xf32>
    %c0_5 = arith.constant 0 : index
    %c0_6 = arith.constant 0 : index
    %8 = vector.load %arg3[%c0_5, %c0_6] : memref<1x128xf32, #tpu.memory_space<vmem>>, vector<1x128xf32>
    %9 = vector.broadcast %8 : vector<1x128xf32> to vector<128x128xf32>
    %10 = arith.addf %7, %9 : vector<128x128xf32>
    %c0_7 = arith.constant 0 : index
    %c0_8 = arith.constant 0 : index
    %11 = vector.load %arg5[%c0_7, %c0_8] : memref<128x128xf32, #tpu.memory_space<vmem>>, vector<128x128xf32>
    tpu.vector_store %arg5[%c0_7, %c0_8], %10 {strides = array<i32>} : memref<128x128xf32, #tpu.memory_space<vmem>>, vector<128x128xf32>,
    return
  }
  func.func @transform_0(%arg0: i32) -> (i32, i32) {
    %c0_i32 = arith.constant 0 : i32
    %c0_i32_0 = arith.constant 0 : i32
    return %arg0, %c0_i32 : i32, i32
  }
  func.func @transform_1(%arg0: i32) -> (i32, i32) {
    %c0_i32 = arith.constant 0 : i32
    %c0_i32_0 = arith.constant 0 : i32
    %c0_i32_1 = arith.constant 0 : i32
    return %c0_i32, %c0_i32_0 : i32, i32
  }
  func.func @transform_2(%arg0: i32) -> (i32, i32) {
    %c0_i32 = arith.constant 0 : i32
    %c0_i32_0 = arith.constant 0 : i32
    %c0_i32_1 = arith.constant 0 : i32
    return %c0_i32, %c0_i32_0 : i32, i32
  }
  func.func @transform_3(%arg0: i32) -> (i32, i32) {
    %c0_i32 = arith.constant 0 : i32
    %c0_i32_0 = arith.constant 0 : i32
    return %arg0, %c0_i32 : i32, i32
  }
  func.func @transform_4(%arg0: i32) -> (i32, i32) {
    %c0_i32 = arith.constant 0 : i32
    %c0_i32_0 = arith.constant 0 : i32
    return %arg0, %c0_i32 : i32, i32
  }
}

module attributes {stable_mosaic.version = 11 : i64} {
  func.func @_spmm_fused_kernel(%arg0: i32, %arg1: i32, %arg2: memref<128x128xbf16, #tpu.memory_space<vmem>>, %arg3: memref<128x128xbf16, #tpu.memory_space<vmem>>, %arg4: memref<128x128xf32, #tpu.memory_space<vmem>>, %arg5: memref<128x256xbf16, #tpu.memory_space<vmem>>, %arg6: memref<1x128xf32, #tpu.memory_space<vmem>>, %arg7: memref<128x128xbf16, #tpu.memory_space<vmem>>, %arg8: memref<128x128xf32, #tpu.memory_space<vmem>>, %arg9: memref<128x128xf32, #tpu.memory_space<vmem>>) attributes {dimension_semantics = [#tpu.dimension_semantics<parallel>, #tpu.dimension_semantics<arbitrary>], iteration_bounds = array<i64: 1, 1>, scalar_prefetch = 0 : i64, scratch_operands = 1 : i64, tpu.core_type = #tpu.core_type<tc>, window_params = [{transform_indices = @transform_0, window_bounds = array<i64: 128, 128>}, {transform_indices = @transform_1, window_bounds = array<i64: 128, 128>}, {transform_indices = @transform_2, window_bounds = array<i64: 128, 128>}, {pipeline_mode = #tpu.pipeline_mode<synchronous>, transform_indices = @transform_3, window_bounds = array<i64: 128, 256>}, {pipeline_mode = #tpu.pipeline_mode<synchronous>, transform_indices = @transform_4, window_bounds = array<i64: 1, 128>}, {transform_indices = @transform_5, window_bounds = array<i64: 128, 128>}, {transform_indices = @transform_6, window_bounds = array<i64: 128, 128>}]} {
    %c0_i32 = arith.constant 0 : i32
    %0 = arith.cmpi eq, %arg1, %c0_i32 : i32
    %1 = arith.extui %0 : i1 to i32
    %c0_i32_0 = arith.constant 0 : i32
    %2 = arith.cmpi ne, %1, %c0_i32_0 : i32
    scf.if %2 {
      %cst_10 = arith.constant 0.000000e+00 : f32
      %12 = vector.broadcast %cst_10 : f32 to vector<128x128xf32>
      %c0_11 = arith.constant 0 : index
      %c0_12 = arith.constant 0 : index
      %13 = vector.load %arg9[%c0_11, %c0_12] : memref<128x128xf32, #tpu.memory_space<vmem>>, vector<128x128xf32>
      tpu.vector_store %arg9[%c0_11, %c0_12], %12 {strides = array<i32>} : memref<128x128xf32, #tpu.memory_space<vmem>>, vector<128x128xf32>,
    } else {
    }
    %c0 = arith.constant 0 : index
    %c0_1 = arith.constant 0 : index
    %3 = vector.load %arg9[%c0, %c0_1] : memref<128x128xf32, #tpu.memory_space<vmem>>, vector<128x128xf32>
    %c0_2 = arith.constant 0 : index
    %c0_3 = arith.constant 0 : index
    %4 = vector.load %arg2[%c0_2, %c0_3] : memref<128x128xbf16, #tpu.memory_space<vmem>>, vector<128x128xbf16>
    %c0_4 = arith.constant 0 : index
    %c0_5 = arith.constant 0 : index
    %5 = vector.load %arg3[%c0_4, %c0_5] : memref<128x128xbf16, #tpu.memory_space<vmem>>, vector<128x128xbf16>
    %cst = arith.constant dense<0.000000e+00> : vector<128x128xf32>
    %6 = tpu.matmul %4, %5, %cst {dimension_numbers = #tpu.dot_dimension_numbers<[1], [0], [0], [1], [0, 0, 1, 1], [], []>} : vector<128x128xbf16>, vector<128x128xbf16>, vector<128x128xf32> -> vector<128x128xf32>
    %7 = arith.addf %3, %6 : vector<128x128xf32>
    %c0_6 = arith.constant 0 : index
    %c0_7 = arith.constant 0 : index
    %8 = vector.load %arg9[%c0_6, %c0_7] : memref<128x128xf32, #tpu.memory_space<vmem>>, vector<128x128xf32>
    tpu.vector_store %arg9[%c0_6, %c0_7], %7 {strides = array<i32>} : memref<128x128xf32, #tpu.memory_space<vmem>>, vector<128x128xf32>,
    %c0_i32_8 = arith.constant 0 : i32
    %9 = arith.cmpi eq, %arg1, %c0_i32_8 : i32
    %10 = arith.extui %9 : i1 to i32
    %c0_i32_9 = arith.constant 0 : i32
    %11 = arith.cmpi ne, %10, %c0_i32_9 : i32
    scf.if %11 {
      %c0_10 = arith.constant 0 : index
      %c0_11 = arith.constant 0 : index
      %12 = vector.load %arg9[%c0_10, %c0_11] : memref<128x128xf32, #tpu.memory_space<vmem>>, vector<128x128xf32>
      %c0_12 = arith.constant 0 : index
      %c0_13 = arith.constant 0 : index
      %13 = vector.load %arg4[%c0_12, %c0_13] : memref<128x128xf32, #tpu.memory_space<vmem>>, vector<128x128xf32>
      %14 = arith.addf %12, %13 : vector<128x128xf32>
      %cst_14 = arith.constant 0.000000e+00 : f32
      %15 = vector.broadcast %cst_14 : f32 to vector<128x128xf32>
      %16 = arith.maximumf %14, %15 : vector<128x128xf32>
      %17 = arith.truncf %16 : vector<128x128xf32> to vector<128x128xbf16>
      %c0_15 = arith.constant 0 : index
      %c0_16 = arith.constant 0 : index
      %18 = vector.load %arg5[%c0_15, %c0_16] : memref<128x256xbf16, #tpu.memory_space<vmem>>, vector<128x256xbf16>
      %cst_17 = arith.constant dense<0.000000e+00> : vector<128x256xf32>
      %19 = tpu.matmul %17, %18, %cst_17 {dimension_numbers = #tpu.dot_dimension_numbers<[1], [0], [0], [1], [0, 0, 1, 1], [], []>} : vector<128x128xbf16>, vector<128x256xbf16>, vector<128x256xf32> -> vector<128x256xf32>
      %20 = vector.extract_strided_slice %19 {offsets = [0, 0], sizes = [128, 128], strides = [1, 1]} : vector<128x256xf32> to vector<128x128xf32>
      %21 = arith.truncf %20 : vector<128x128xf32> to vector<128x128xbf16>
      %c0_18 = arith.constant 0 : index
      %c0_19 = arith.constant 0 : index
      %22 = vector.load %arg7[%c0_18, %c0_19] : memref<128x128xbf16, #tpu.memory_space<vmem>>, vector<128x128xbf16>
      tpu.vector_store %arg7[%c0_18, %c0_19], %21 {strides = array<i32>} : memref<128x128xbf16, #tpu.memory_space<vmem>>, vector<128x128xbf16>,
      %23 = vector.extract_strided_slice %19 {offsets = [0, 128], sizes = [128, 128], strides = [1, 1]} : vector<128x256xf32> to vector<128x128xf32>
      %c0_20 = arith.constant 0 : index
      %c0_21 = arith.constant 0 : index
      %24 = vector.load %arg6[%c0_20, %c0_21] : memref<1x128xf32, #tpu.memory_space<vmem>>, vector<1x128xf32>
      %25 = vector.broadcast %24 : vector<1x128xf32> to vector<128x128xf32>
      %26 = arith.addf %23, %25 : vector<128x128xf32>
      %c0_22 = arith.constant 0 : index
      %c0_23 = arith.constant 0 : index
      %27 = vector.load %arg8[%c0_22, %c0_23] : memref<128x128xf32, #tpu.memory_space<vmem>>, vector<128x128xf32>
      tpu.vector_store %arg8[%c0_22, %c0_23], %26 {strides = array<i32>} : memref<128x128xf32, #tpu.memory_space<vmem>>, vector<128x128xf32>,
    } else {
    }
    return
  }
  func.func @transform_0(%arg0: i32, %arg1: i32) -> (i32, i32) {
    %c0_i32 = arith.constant 0 : i32
    return %arg0, %arg1 : i32, i32
  }
  func.func @transform_1(%arg0: i32, %arg1: i32) -> (i32, i32) {
    %c0_i32 = arith.constant 0 : i32
    %c0_i32_0 = arith.constant 0 : i32
    return %arg1, %c0_i32 : i32, i32
  }
  func.func @transform_2(%arg0: i32, %arg1: i32) -> (i32, i32) {
    %c0_i32 = arith.constant 0 : i32
    %c0_i32_0 = arith.constant 0 : i32
    return %arg0, %c0_i32 : i32, i32
  }
  func.func @transform_3(%arg0: i32, %arg1: i32) -> (i32, i32) {
    %c0_i32 = arith.constant 0 : i32
    %c0_i32_0 = arith.constant 0 : i32
    %c0_i32_1 = arith.constant 0 : i32
    return %c0_i32, %c0_i32_0 : i32, i32
  }
  func.func @transform_4(%arg0: i32, %arg1: i32) -> (i32, i32) {
    %c0_i32 = arith.constant 0 : i32
    %c0_i32_0 = arith.constant 0 : i32
    %c0_i32_1 = arith.constant 0 : i32
    return %c0_i32, %c0_i32_0 : i32, i32
  }
  func.func @transform_5(%arg0: i32, %arg1: i32) -> (i32, i32) {
    %c0_i32 = arith.constant 0 : i32
    %c0_i32_0 = arith.constant 0 : i32
    return %arg0, %c0_i32 : i32, i32
  }
  func.func @transform_6(%arg0: i32, %arg1: i32) -> (i32, i32) {
    %c0_i32 = arith.constant 0 : i32
    %c0_i32_0 = arith.constant 0 : i32
    return %arg0, %c0_i32 : i32, i32
  }
}

</mosaic_0001>

<bundles_post_ra>
// kernel: resgcn_block_forward.5
= control target key start
LH: loop header
LB: loop body
LE: loop exit
PB: predicated region body
PF: predicated region fallthrough
CT: control target
= control target key end

     0   :  { %s743_s1 = inlined_call_operand.vmem [shape: bf16[128,128], index: 1, kind: input, shape index: {}]   ;;  %s744_s0 = inlined_call_operand.vmem [shape: bf16[128,128], index: 0, kind: input, shape index: {}]   ;;  %s745_s2 = inlined_call_operand.vmem [shape: f32[128,128], index: 2, kind: input, shape index: {}]   ;;  %s746_s3 = inlined_call_operand.vmem [shape: f32[128,128], index: 3, kind: input, shape index: {}]   ;;  %s747_s4 = inlined_call_operand.vmem [shape: f32[128,128], index: 4, kind: output, shape index: {}]  }
   0x1   :  { %v510_v0 = vld [vmem:[%s743_s1 + $0x38] sm:$0xff]   ;;  %v511_v1 = vld [vmem:[%s743_s1 + $0x30] sm:$0xff]   ;;  %v512_v2 = vld [vmem:[%s743_s1 + $0x28] sm:$0xff]  }
   0x2   :  { %462 = vmatprep.subr.bf16.mxu0 %v510_v0  ;;  %494 = vmatprep.subr.bf16.mxu1 %v510_v0  ;;  %v513_v3 = vld [vmem:[%s743_s1 + $0x20] sm:$0xff]   ;;  %v514_v6 = vld [vmem:[%s743_s1 + $0x18] sm:$0xff]   ;;  %v515_v7 = vld [vmem:[%s743_s1 + $0x10] sm:$0xff]  }
   0x3   :  { %463 = vmatpush3.bf16.msra.mxu0 %v510_v0  ;;  %502 = vmatpush3.bf16.msra.mxu1 %v510_v0  ;;  %v518_v4 = vld [vmem:[%s744_s0] sm:$0xff]   ;;  %v516_v8 = vld [vmem:[%s743_s1 + $0x8] sm:$0xff]   ;;  %v522_v12 = vld [vmem:[%s744_s0 + $0x10] sm:$0xff]  }
   0x4   :  { %464 = vmatprep.subr.bf16.mxu0 %v511_v1  ;;  %495 = vmatprep.subr.bf16.mxu1 %v511_v1  ;;  %v519_v5 = vld [vmem:[%s744_s0 + $0x20] sm:$0xff]   ;;  %v520_v10 = vld [vmem:[%s744_s0 + $0x8] sm:$0xff]   ;;  %v523_v13 = vld [vmem:[%s744_s0 + $0x30] sm:$0xff]  }
   0x5   :  { %478 = vmatprep.mubr.bf16.mxu0 %v518_v4  ;;  %486 = vmatprep.mubr.bf16.mxu1 %v519_v5  ;;  %v517_v9 = vld [vmem:[%s743_s1] sm:$0xff]   ;;  %v521_v11 = vld [vmem:[%s744_s0 + $0x28] sm:$0xff]   ;;  %v524_v14 = vld [vmem:[%s744_s0 + $0x18] sm:$0xff]  }
   0x6   :  { %v525_v15 = vld [vmem:[%s744_s0 + $0x38] sm:$0xff]   ;;  %v332_v16 = vld [vmem:[%s745_s2 + $0x10] sm:$0xff]  ;;  %v330_v20 = vld [vmem:[%s745_s2] sm:$0xff] }
   0x7   :  { %465 = vmatpush3.bf16.msra.mxu0 %v511_v1  ;;  %503 = vmatpush3.bf16.msra.mxu1 %v511_v1  ;;  %v340_v17 = vld [vmem:[%s745_s2 + $0x50] sm:$0xff]  ;;  %v338_v21 = vld [vmem:[%s745_s2 + $0x40] sm:$0xff]  ;;  %v333_v33 = vld [vmem:[%s745_s2 + $0x18] sm:$0xff] }
   0x8   :  { %466 = vmatprep.subr.bf16.mxu0 %v512_v2  ;;  %496 = vmatprep.subr.bf16.mxu1 %v512_v2  ;;  %v380_v24 = vld [vmem:[%s746_s3 + $0x10] sm:$0xff]  ;;  %v378_v31 = vld [vmem:[%s746_s3] sm:$0xff]  ;;  %v341_v34 = vld [vmem:[%s745_s2 + $0x58] sm:$0xff] }
   0x9   :  { %v388_v25 = vld [vmem:[%s746_s3 + $0x50] sm:$0xff]  ;;  %v386_v35 = vld [vmem:[%s746_s3 + $0x40] sm:$0xff]  ;;  %v331_v38 = vld [vmem:[%s745_s2 + $0x8] sm:$0xff] }
   0xa   :  { %v339_v39 = vld [vmem:[%s745_s2 + $0x48] sm:$0xff]  ;;  %v336_v48 = vld [vmem:[%s745_s2 + $0x30] sm:$0xff]  ;;  %v381_v52 = vld [vmem:[%s746_s3 + $0x18] sm:$0xff] }
   0xb   :  { %467 = vmatpush3.bf16.msra.mxu0 %v512_v2  ;;  %504 = vmatpush3.bf16.msra.mxu1 %v512_v2  ;;  %v344_v49 = vld [vmem:[%s745_s2 + $0x70] sm:$0xff]  ;;  %v389_v53 = vld [vmem:[%s746_s3 + $0x58] sm:$0xff]  ;;  %v379_v58 = vld [vmem:[%s746_s3 + $0x8] sm:$0xff] }
   0xc   :  { %468 = vmatprep.subr.bf16.mxu0 %v513_v3  ;;  %497 = vmatprep.subr.bf16.mxu1 %v513_v3  ;;  %v387_v59 = vld [vmem:[%s746_s3 + $0x48] sm:$0xff]  ;;  %v384_v1 = vld [vmem:[%s746_s3 + $0x30] sm:$0xff]  ;;  %v342_v4 = vld [vmem:[%s745_s2 + $0x60] sm:$0xff] }
   0xf   :  { %469 = vmatpush3.bf16.msra.mxu0 %v513_v3  ;;  %505 = vmatpush3.bf16.msra.mxu1 %v513_v3  ;;  %v334_v3 = vld [vmem:[%s745_s2 + $0x20] sm:$0xff] }
  0x10   :  { %470 = vmatprep.subr.bf16.mxu0 %v514_v6  ;;  %498 = vmatprep.subr.bf16.mxu1 %v514_v6 }
  0x13   :  { %471 = vmatpush3.bf16.msra.mxu0 %v514_v6  ;;  %506 = vmatpush3.bf16.msra.mxu1 %v514_v6 }
  0x14   :  { %472 = vmatprep.subr.bf16.mxu0 %v515_v7  ;;  %499 = vmatprep.subr.bf16.mxu1 %v515_v7 }
  0x17   :  { %473 = vmatpush3.bf16.msra.mxu0 %v515_v7  ;;  %507 = vmatpush3.bf16.msra.mxu1 %v515_v7  ;;  %v392_v7 = vld [vmem:[%s746_s3 + $0x70] sm:$0xff] }
  0x18   :  { %474 = vmatprep.subr.bf16.mxu0 %v516_v8  ;;  %500 = vmatprep.subr.bf16.mxu1 %v516_v8 }
  0x1b   :  { %475 = vmatpush3.bf16.msra.mxu0 %v516_v8  ;;  %508 = vmatpush3.bf16.msra.mxu1 %v516_v8 }
  0x1c   :  { %476 = vmatprep.subr.bf16.mxu0 %v517_v9  ;;  %501 = vmatprep.subr.bf16.mxu1 %v517_v9 }
  0x1f   :  { %477 = vmatpush3.bf16.msra.mxu0 %v517_v9  ;;  %509 = vmatpush3.bf16.msra.mxu1 %v517_v9 }
  0x22   :  { %479 = vmatmul.mubr.bf16.vlgmr.msra.gmra.mxu0 %v520_v10  ;;  %487 = vmatmul.mubr.bf16.vlgmr.msra.gmra.mxu1 %v521_v11  ;;  %v337_v10 = vld [vmem:[%s745_s2 + $0x38] sm:$0xff] }
  0x23   :  { %482 = vmatprep.mubr.bf16.mxu0 %v522_v12  ;;  %490 = vmatprep.mubr.bf16.mxu1 %v523_v13  ;;  %v345_v11 = vld [vmem:[%s745_s2 + $0x78] sm:$0xff] }
  0x2a   :  { %483 = vmatmul.mubr.bf16.gmra.mxu0 %v524_v14  ;;  %491 = vmatmul.mubr.bf16.gmra.mxu1 %v525_v15 }
  0xe2   :  { %v480_v18 = vpop.f32.mrf.mxu0  ;;  %v488_v19 = vpop.f32.mrf.mxu1 }
  0xe3   :  { %v348_v22 = vadd.f32 %v480_v18, %v332_v16  ;;  %v356_v23 = vadd.f32 %v488_v19, %v340_v17 }
  0xe4   :  { %v216_v26 = vpop.f32.mrf.mxu0  ;;  %v248_v27 = vpop.f32.mrf.mxu1 }
  0xe5   :  { %v364_v28 = vmax.f32 %v348_v22, 0.0  ;;  %v372_v29 = vmax.f32 %v356_v23, 0.0  ;;  %v346_v30 = vadd.f32 %v330_v20, %v216_v26  ;;  %v354_v32 = vadd.f32 %v338_v21, %v248_v27  ;;  %v335_v20 = vld [vmem:[%s745_s2 + $0x28] sm:$0xff] }
  0xe6   :  { %v481_v36 = vpop.f32.mrf.mxu0  ;;  %v489_v37 = vpop.f32.mrf.mxu1  ;;  %v343_v21 = vld [vmem:[%s745_s2 + $0x68] sm:$0xff] }
  0xe7   :  { %v396_v40 = vadd.f32 %v380_v24, %v364_v28  ;;  %v404_v41 = vadd.f32 %v388_v25, %v372_v29  ;;  %v362_v42 = vmax.f32 %v346_v30, 0.0  ;;  %v370_v43 = vmax.f32 %v354_v32, 0.0  ;;  %v382_v24 = vld [vmem:[%s746_s3 + $0x20] sm:$0xff]  ;;  %v385_v30 = vld [vmem:[%s746_s3 + $0x38] sm:$0xff] }
  0xe8   :  { %v349_v44 = vadd.f32 %v481_v36, %v333_v33  ;;  %v357_v45 = vadd.f32 %v489_v37, %v341_v34  ;;  %v219_v46 = vpop.f32.mrf.mxu0  ;;  %v251_v47 = vpop.f32.mrf.mxu1  ;;  %v390_v25 = vld [vmem:[%s746_s3 + $0x60] sm:$0xff] }
  0xe9   :  { %412 = vst [vmem:[%s747_s4 + $0x10] sm:$0xff] %v396_v40  ;;  %420 = vst [vmem:[%s747_s4 + $0x50] sm:$0xff] %v404_v41  ;;  %v394_v50 = vadd.f32 %v378_v31, %v362_v42  ;;  %v402_v51 = vadd.f32 %v386_v35, %v370_v43  ;;  %v347_v54 = vadd.f32 %v331_v38, %v219_v46  ;;  %v393_v31 = vld [vmem:[%s746_s3 + $0x78] sm:$0xff]  ;;  %v383_v40 = vld [vmem:[%s746_s3 + $0x28] sm:$0xff] }
  0xea   :  { %v355_v55 = vadd.f32 %v339_v39, %v251_v47  ;;  %v365_v56 = vmax.f32 %v349_v44, 0.0  ;;  %v373_v57 = vmax.f32 %v357_v45, 0.0  ;;  %v484_v60 = vpop.f32.mrf.mxu0  ;;  %v492_v61 = vpop.f32.mrf.mxu1  ;;  %v391_v41 = vld [vmem:[%s746_s3 + $0x68] sm:$0xff] }
  0xeb   :  { %410 = vst [vmem:[%s747_s4] sm:$0xff] %v394_v50  ;;  %418 = vst [vmem:[%s747_s4 + $0x40] sm:$0xff] %v402_v51  ;;  %v363_v62 = vmax.f32 %v347_v54, 0.0  ;;  %v352_v0 = vadd.f32 %v484_v60, %v336_v48  ;;  %v360_v2 = vadd.f32 %v492_v61, %v344_v49 }
  0xec   :  { %v371_v63 = vmax.f32 %v355_v55, 0.0  ;;  %v397_v5 = vadd.f32 %v381_v52, %v365_v56  ;;  %v405_v6 = vadd.f32 %v389_v53, %v373_v57  ;;  %v232_v8 = vpop.f32.mrf.mxu0  ;;  %v264_v9 = vpop.f32.mrf.mxu1 }
  0xed   :  { %v395_v12 = vadd.f32 %v379_v58, %v363_v62  ;;  %v368_v14 = vmax.f32 %v352_v0, 0.0  ;;  %v376_v15 = vmax.f32 %v360_v2, 0.0  ;;  %v350_v16 = vadd.f32 %v334_v3, %v232_v8 }
  0xee   :  { %v403_v13 = vadd.f32 %v387_v59, %v371_v63  ;;  %413 = vst [vmem:[%s747_s4 + $0x18] sm:$0xff] %v397_v5  ;;  %421 = vst [vmem:[%s747_s4 + $0x58] sm:$0xff] %v405_v6  ;;  %v358_v17 = vadd.f32 %v342_v4, %v264_v9  ;;  %v485_v18 = vpop.f32.mrf.mxu0  ;;  %v493_v19 = vpop.f32.mrf.mxu1 }
  0xef   :  { %411 = vst [vmem:[%s747_s4 + $0x8] sm:$0xff] %v395_v12  ;;  %v400_v22 = vadd.f32 %v384_v1, %v368_v14  ;;  %v408_v23 = vadd.f32 %v392_v7, %v376_v15  ;;  %v353_v26 = vadd.f32 %v485_v18, %v337_v10  ;;  %v361_v27 = vadd.f32 %v493_v19, %v345_v11 }
  0xf0   :  { %419 = vst [vmem:[%s747_s4 + $0x48] sm:$0xff] %v403_v13  ;;  %v366_v28 = vmax.f32 %v350_v16, 0.0  ;;  %v374_v29 = vmax.f32 %v358_v17, 0.0  ;;  %v235_v32 = vpop.f32.mrf.mxu0  ;;  %v267_v33 = vpop.f32.mrf.mxu1 }
  0xf1   :  { %416 = vst [vmem:[%s747_s4 + $0x30] sm:$0xff] %v400_v22  ;;  %424 = vst [vmem:[%s747_s4 + $0x70] sm:$0xff] %v408_v23  ;;  %v369_v34 = vmax.f32 %v353_v26, 0.0  ;;  %v377_v35 = vmax.f32 %v361_v27, 0.0  ;;  %v351_v36 = vadd.f32 %v335_v20, %v235_v32  ;;  %v359_v37 = vadd.f32 %v343_v21, %v267_v33 }
  0xf2   :  { %v398_v38 = vadd.f32 %v382_v24, %v366_v28  ;;  %v406_v39 = vadd.f32 %v390_v25, %v374_v29 }
  0xf3   :  { %v401_v42 = vadd.f32 %v385_v30, %v369_v34  ;;  %v409_v43 = vadd.f32 %v393_v31, %v377_v35  ;;  %v367_v44 = vmax.f32 %v351_v36, 0.0  ;;  %v375_v45 = vmax.f32 %v359_v37, 0.0 }
  0xf4   :  { %414 = vst [vmem:[%s747_s4 + $0x20] sm:$0xff] %v398_v38  ;;  %422 = vst [vmem:[%s747_s4 + $0x60] sm:$0xff] %v406_v39 }
  0xf5   :  { %417 = vst [vmem:[%s747_s4 + $0x38] sm:$0xff] %v401_v42  ;;  %425 = vst [vmem:[%s747_s4 + $0x78] sm:$0xff] %v409_v43  ;;  %v399_v46 = vadd.f32 %v383_v40, %v367_v44  ;;  %v407_v47 = vadd.f32 %v391_v41, %v375_v45 }
  0xf7   :  { %415 = vst [vmem:[%s747_s4 + $0x28] sm:$0xff] %v399_v46  ;;  %423 = vst [vmem:[%s747_s4 + $0x68] sm:$0xff] %v407_v47 }

// kernel: resgcn_block_forward.3
= control target key start
LH: loop header
LB: loop body
LE: loop exit
PB: predicated region body
PF: predicated region fallthrough
CT: control target
= control target key end

     0   :  { %v514_v1 = vmov 0   ;;  %s737_s1 = inlined_call_operand.vmem [shape: bf16[128,256], index: 1, kind: input, shape index: {}]   ;;  %s738_s0 = inlined_call_operand.vmem [shape: f32[128,128], index: 0, kind: input, shape index: {}]   ;;  %s739_s2 = inlined_call_operand.vmem [shape: f32[1,128], index: 2, kind: input, shape index: {}]   ;;  %s740_s4 = inlined_call_operand.vmem [shape: f32[128,128], index: 4, kind: output, shape index: {1}]   ;;  %s741_s3 = inlined_call_operand.vmem [shape: bf16[128,128], index: 3, kind: output, shape index: {0}]  }
   0x1   :  { %v490_v0 = vld [vmem:[%s737_s1 + $0x74] ss:$8 sps:$4 sm:$0xff]   ;;  %169 = vmatprep.mubr.bf16.mxu0 %v514_v1  ;;  %209 = vmatprep.mubr.bf16.mxu1 %v514_v1  ;;  %v492_v2 = vld [vmem:[%s737_s1 + $0x70] ss:$8 sps:$4 sm:$0xff]   ;;  %v493_v3 = vld [vmem:[%s737_s1 + $0x64] ss:$8 sps:$4 sm:$0xff]  }
   0x2   :  { %137 = vmatprep.subr.bf16.mxu0 %v490_v0  ;;  %473 = vmatprep.subr.bf16.mxu1 %v490_v0  ;;  %v495_v4 = vld [vmem:[%s737_s1 + $0x60] ss:$8 sps:$4 sm:$0xff]   ;;  %v496_v5 = vld [vmem:[%s737_s1 + $0x54] ss:$8 sps:$4 sm:$0xff]   ;;  %v498_v6 = vld [vmem:[%s737_s1 + $0x50] ss:$8 sps:$4 sm:$0xff]  }
   0x3   :  { %138 = vmatpush1.bf16.msra.mxu0 %v492_v2  ;;  %481 = vmatpush1.bf16.msra.mxu1 %v492_v2  ;;  %v499_v7 = vld [vmem:[%s737_s1 + $0x44] ss:$8 sps:$4 sm:$0xff]   ;;  %v501_v8 = vld [vmem:[%s737_s1 + $0x40] ss:$8 sps:$4 sm:$0xff]   ;;  %v502_v9 = vld [vmem:[%s737_s1 + $0x34] ss:$8 sps:$4 sm:$0xff]  }
   0x4   :  { %139 = vmatprep.subr.bf16.mxu0 %v493_v3  ;;  %474 = vmatprep.subr.bf16.mxu1 %v493_v3  ;;  %v504_v10 = vld [vmem:[%s737_s1 + $0x30] ss:$8 sps:$4 sm:$0xff]   ;;  %v505_v11 = vld [vmem:[%s737_s1 + $0x24] ss:$8 sps:$4 sm:$0xff]   ;;  %v507_v12 = vld [vmem:[%s737_s1 + $0x20] ss:$8 sps:$4 sm:$0xff]  }
   0x5   :  { %v508_v13 = vld [vmem:[%s737_s1 + $0x14] ss:$8 sps:$4 sm:$0xff]   ;;  %v510_v14 = vld [vmem:[%s737_s1 + $0x10] ss:$8 sps:$4 sm:$0xff]   ;;  %v511_v15 = vld [vmem:[%s737_s1 + $0x4] ss:$8 sps:$4 sm:$0xff]  }
   0x6   :  { %v513_v16 = vld [vmem:[%s737_s1] ss:$8 sps:$4 sm:$0xff]   ;;  %v19_v23 = vld [vmem:[%s738_s0 + $0x10] sm:$0xff]  ;;  %v20_v24 = vld [vmem:[%s738_s0 + $0x18] sm:$0xff] }
   0x7   :  { %140 = vmatpush1.bf16.msra.mxu0 %v495_v4  ;;  %482 = vmatpush1.bf16.msra.mxu1 %v495_v4  ;;  %v17_v17 = vld [vmem:[%s738_s0] sm:$0xff]  ;;  %v18_v18 = vld [vmem:[%s738_s0 + $0x8] sm:$0xff]  ;;  %v27_v25 = vld [vmem:[%s738_s0 + $0x50] sm:$0xff]  ;;  %v34_v27 = vpack.c.bf16 %v20_v24, %v19_v23 }
   0x8   :  { %141 = vmatprep.subr.bf16.mxu0 %v496_v5  ;;  %475 = vmatprep.subr.bf16.mxu1 %v496_v5  ;;  %v25_v19 = vld [vmem:[%s738_s0 + $0x40] sm:$0xff]  ;;  %v26_v20 = vld [vmem:[%s738_s0 + $0x48] sm:$0xff]  ;;  %v33_v21 = vpack.c.bf16 %v18_v18, %v17_v17  ;;  %v28_v26 = vld [vmem:[%s738_s0 + $0x58] sm:$0xff] }
   0x9   :  { %v37_v22 = vpack.c.bf16 %v26_v20, %v25_v19  ;;  %v38_v28 = vpack.c.bf16 %v28_v26, %v27_v25  ;;  %v21_v29 = vld [vmem:[%s738_s0 + $0x20] sm:$0xff]  ;;  %v22_v30 = vld [vmem:[%s738_s0 + $0x28] sm:$0xff]  ;;  %v23_v35 = vld [vmem:[%s738_s0 + $0x30] sm:$0xff] }
   0xa   :  { %v29_v31 = vld [vmem:[%s738_s0 + $0x60] sm:$0xff]  ;;  %v30_v32 = vld [vmem:[%s738_s0 + $0x68] sm:$0xff]  ;;  %v35_v33 = vpack.c.bf16 %v22_v30, %v21_v29  ;;  %v24_v36 = vld [vmem:[%s738_s0 + $0x38] sm:$0xff] }
   0xb   :  { %142 = vmatpush1.bf16.msra.mxu0 %v498_v6  ;;  %483 = vmatpush1.bf16.msra.mxu1 %v498_v6  ;;  %v39_v34 = vpack.c.bf16 %v30_v32, %v29_v31  ;;  %v31_v37 = vld [vmem:[%s738_s0 + $0x70] sm:$0xff]  ;;  %v32_v38 = vld [vmem:[%s738_s0 + $0x78] sm:$0xff]  ;;  %v36_v39 = vpack.c.bf16 %v24_v36, %v23_v35  ;;  %v647_v43 = vld [vmem:[%s739_s2] ss:$0 sm:$0xff] }
   0xc   :  { %143 = vmatprep.subr.bf16.mxu0 %v499_v7  ;;  %476 = vmatprep.subr.bf16.mxu1 %v499_v7  ;;  %v40_v40 = vpack.c.bf16 %v32_v38, %v31_v37 }
   0xf   :  { %144 = vmatpush1.bf16.msra.mxu0 %v501_v8  ;;  %484 = vmatpush1.bf16.msra.mxu1 %v501_v8 }
  0x10   :  { %145 = vmatprep.subr.bf16.mxu0 %v502_v9  ;;  %477 = vmatprep.subr.bf16.mxu1 %v502_v9 }
  0x13   :  { %146 = vmatpush1.bf16.msra.mxu0 %v504_v10  ;;  %485 = vmatpush1.bf16.msra.mxu1 %v504_v10 }
  0x14   :  { %147 = vmatprep.subr.bf16.mxu0 %v505_v11  ;;  %478 = vmatprep.subr.bf16.mxu1 %v505_v11 }
  0x17   :  { %148 = vmatpush1.bf16.msra.mxu0 %v507_v12  ;;  %486 = vmatpush1.bf16.msra.mxu1 %v507_v12 }
  0x18   :  { %149 = vmatprep.subr.bf16.mxu0 %v508_v13  ;;  %479 = vmatprep.subr.bf16.mxu1 %v508_v13 }
  0x1b   :  { %150 = vmatpush1.bf16.msra.mxu0 %v510_v14  ;;  %487 = vmatpush1.bf16.msra.mxu1 %v510_v14 }
  0x1c   :  { %151 = vmatprep.subr.bf16.mxu0 %v511_v15  ;;  %480 = vmatprep.subr.bf16.mxu1 %v511_v15 }
  0x1f   :  { %152 = vmatpush1.bf16.msra.mxu0 %v513_v16  ;;  %488 = vmatpush1.bf16.msra.mxu1 %v513_v16 }
  0x22   :  { %170 = vmatmul.mubr.bf16.vlgmr.msra.gmra.mxu0 %v33_v21  ;;  %210 = vmatmul.mubr.bf16.vlgmr.msra.gmra.mxu1 %v37_v22 }
  0x23   :  { %179 = vmatprep.mubr.bf16.mxu0 %v514_v1  ;;  %219 = vmatprep.mubr.bf16.mxu1 %v514_v1 }
  0x2a   :  { %180 = vmatmul.mubr.bf16.gmra.mxu0 %v34_v27  ;;  %220 = vmatmul.mubr.bf16.gmra.mxu1 %v38_v28 }
  0x2b   :  { %189 = vmatprep.mubr.bf16.mxu0 %v514_v1  ;;  %229 = vmatprep.mubr.bf16.mxu1 %v514_v1 }
  0x32   :  { %190 = vmatmul.mubr.bf16.gmra.mxu0 %v35_v33  ;;  %230 = vmatmul.mubr.bf16.gmra.mxu1 %v39_v34 }
  0x33   :  { %199 = vmatprep.mubr.bf16.mxu0 %v514_v1  ;;  %239 = vmatprep.mubr.bf16.mxu1 %v514_v1 }
  0x3a   :  { %200 = vmatmul.mubr.bf16.gmra.mxu0 %v36_v39  ;;  %240 = vmatmul.mubr.bf16.gmra.mxu1 %v40_v40 }
  0xe2   :  { %v171_v41 = vpop.f32.mrf.mxu0  ;;  %v211_v42 = vpop.f32.mrf.mxu1 }
  0xe4   :  { %v173_v44 = vpop.f32.mrf.mxu0  ;;  %v213_v45 = vpop.f32.mrf.mxu1 }
  0xe5   :  { %v337_v46 = vadd.f32 %v647_v43, %v173_v44  ;;  %v345_v47 = vadd.f32 %v647_v43, %v213_v45 }
  0xe6   :  { %v175_v48 = vpop.f32.mrf.mxu0  ;;  %v215_v49 = vpop.f32.mrf.mxu1 }
  0xe7   :  { %353 = vst [vmem:[%s740_s4] sm:$0xff] %v337_v46  ;;  %361 = vst [vmem:[%s740_s4 + $0x40] sm:$0xff] %v345_v47  ;;  %v429_v50 = vpack.c.bf16 %v175_v48, %v171_v41  ;;  %v449_v51 = vpack.c.bf16 %v215_v49, %v211_v42 }
  0xe8   :  { %v177_v52 = vpop.f32.mrf.mxu0  ;;  %v217_v53 = vpop.f32.mrf.mxu1 }
  0xe9   :  { %430 = vst [vmem:[%s741_s3] sm:$0xff] %v429_v50   ;;  %469 = vst [vmem:[%s741_s3 + $0x20] sm:$0xff] %v449_v51   ;;  %v338_v54 = vadd.f32 %v647_v43, %v177_v52  ;;  %v346_v55 = vadd.f32 %v647_v43, %v217_v53 }
  0xea   :  { %v181_v56 = vpop.f32.mrf.mxu0  ;;  %v221_v57 = vpop.f32.mrf.mxu1 }
  0xeb   :  { %354 = vst [vmem:[%s740_s4 + $0x8] sm:$0xff] %v338_v54  ;;  %362 = vst [vmem:[%s740_s4 + $0x48] sm:$0xff] %v346_v55 }
  0xec   :  { %v183_v58 = vpop.f32.mrf.mxu0  ;;  %v223_v59 = vpop.f32.mrf.mxu1 }
  0xed   :  { %v339_v60 = vadd.f32 %v647_v43, %v183_v58  ;;  %v347_v61 = vadd.f32 %v647_v43, %v223_v59 }
  0xee   :  { %v185_v62 = vpop.f32.mrf.mxu0  ;;  %v225_v63 = vpop.f32.mrf.mxu1 }
  0xef   :  { %355 = vst [vmem:[%s740_s4 + $0x10] sm:$0xff] %v339_v60  ;;  %363 = vst [vmem:[%s740_s4 + $0x50] sm:$0xff] %v347_v61  ;;  %v434_v0 = vpack.c.bf16 %v185_v62, %v181_v56  ;;  %v454_v1 = vpack.c.bf16 %v225_v63, %v221_v57 }
  0xf0   :  { %v187_v2 = vpop.f32.mrf.mxu0  ;;  %v227_v3 = vpop.f32.mrf.mxu1 }
  0xf1   :  { %466 = vst [vmem:[%s741_s3 + $0x8] sm:$0xff] %v434_v0   ;;  %470 = vst [vmem:[%s741_s3 + $0x28] sm:$0xff] %v454_v1   ;;  %v340_v4 = vadd.f32 %v647_v43, %v187_v2  ;;  %v348_v5 = vadd.f32 %v647_v43, %v227_v3 }
  0xf2   :  { %v191_v6 = vpop.f32.mrf.mxu0  ;;  %v231_v7 = vpop.f32.mrf.mxu1 }
  0xf3   :  { %356 = vst [vmem:[%s740_s4 + $0x18] sm:$0xff] %v340_v4  ;;  %364 = vst [vmem:[%s740_s4 + $0x58] sm:$0xff] %v348_v5 }
  0xf4   :  { %v193_v8 = vpop.f32.mrf.mxu0  ;;  %v233_v9 = vpop.f32.mrf.mxu1 }
  0xf5   :  { %v341_v10 = vadd.f32 %v647_v43, %v193_v8  ;;  %v349_v11 = vadd.f32 %v647_v43, %v233_v9 }
  0xf6   :  { %v195_v12 = vpop.f32.mrf.mxu0  ;;  %v235_v13 = vpop.f32.mrf.mxu1 }
  0xf7   :  { %357 = vst [vmem:[%s740_s4 + $0x20] sm:$0xff] %v341_v10  ;;  %365 = vst [vmem:[%s740_s4 + $0x60] sm:$0xff] %v349_v11  ;;  %v439_v14 = vpack.c.bf16 %v195_v12, %v191_v6  ;;  %v459_v15 = vpack.c.bf16 %v235_v13, %v231_v7 }
  0xf8   :  { %v197_v16 = vpop.f32.mrf.mxu0  ;;  %v237_v17 = vpop.f32.mrf.mxu1 }
  0xf9   :  { %467 = vst [vmem:[%s741_s3 + $0x10] sm:$0xff] %v439_v14   ;;  %471 = vst [vmem:[%s741_s3 + $0x30] sm:$0xff] %v459_v15   ;;  %v342_v18 = vadd.f32 %v647_v43, %v197_v16  ;;  %v350_v19 = vadd.f32 %v647_v43, %v237_v17 }
  0xfa   :  { %v201_v20 = vpop.f32.mrf.mxu0  ;;  %v241_v21 = vpop.f32.mrf.mxu1 }
  0xfb   :  { %358 = vst [vmem:[%s740_s4 + $0x28] sm:$0xff] %v342_v18  ;;  %366 = vst [vmem:[%s740_s4 + $0x68] sm:$0xff] %v350_v19 }
  0xfc   :  { %v203_v22 = vpop.f32.mrf.mxu0  ;;  %v243_v23 = vpop.f32.mrf.mxu1 }
  0xfd   :  { %v343_v24 = vadd.f32 %v647_v43, %v203_v22  ;;  %v351_v25 = vadd.f32 %v647_v43, %v243_v23 }
  0xfe   :  { %v205_v26 = vpop.f32.mrf.mxu0  ;;  %v245_v27 = vpop.f32.mrf.mxu1 }
  0xff   :  { %359 = vst [vmem:[%s740_s4 + $0x30] sm:$0xff] %v343_v24  ;;  %367 = vst [vmem:[%s740_s4 + $0x70] sm:$0xff] %v351_v25  ;;  %v444_v28 = vpack.c.bf16 %v205_v26, %v201_v20  ;;  %v464_v29 = vpack.c.bf16 %v245_v27, %v241_v21 }
 0x100   :  { %v207_v30 = vpop.f32.mrf.mxu0  ;;  %v247_v31 = vpop.f32.mrf.mxu1 }
 0x101   :  { %468 = vst [vmem:[%s741_s3 + $0x18] sm:$0xff] %v444_v28   ;;  %472 = vst [vmem:[%s741_s3 + $0x38] sm:$0xff] %v464_v29   ;;  %v344_v32 = vadd.f32 %v647_v43, %v207_v30  ;;  %v352_v33 = vadd.f32 %v647_v43, %v247_v31 }
 0x103   :  { %360 = vst [vmem:[%s740_s4 + $0x38] sm:$0xff] %v344_v32  ;;  %368 = vst [vmem:[%s740_s4 + $0x78] sm:$0xff] %v352_v33 }

// kernel: resgcn_block_forward.4
= control target key start
LH: loop header
LB: loop body
LE: loop exit
PB: predicated region body
PF: predicated region fallthrough
CT: control target
= control target key end

     0   :  { %v944_v32 = vmov 0   ;;  %s1225_s1 = inlined_call_operand.vmem [shape: bf16[128,128], index: 1, kind: input, shape index: {}]   ;;  %s1226_s0 = inlined_call_operand.vmem [shape: bf16[128,128], index: 0, kind: input, shape index: {}]   ;;  %s1227_s3 = inlined_call_operand.vmem [shape: bf16[128,256], index: 3, kind: input, shape index: {}]   ;;  %s1228_s2 = inlined_call_operand.vmem [shape: f32[128,128], index: 2, kind: input, shape index: {}]   ;;  %s1229_s4 = inlined_call_operand.vmem [shape: f32[1,128], index: 4, kind: input, shape index: {}]   ;;  %s1230_s6 = inlined_call_operand.vmem [shape: f32[128,128], index: 6, kind: output, shape index: {1}]   ;;  %s1231_s5 = inlined_call_operand.vmem [shape: bf16[128,128], index: 5, kind: output, shape index: {0}]  }
   0x1   :  { %v904_v0 = vld [vmem:[%s1225_s1 + $0x38] sm:$0xff]   ;;  %v905_v1 = vld [vmem:[%s1225_s1 + $0x30] sm:$0xff]   ;;  %v906_v2 = vld [vmem:[%s1225_s1 + $0x28] sm:$0xff]   ;;  %539 = vmatprep.mubr.bf16.mxu1 %v944_v32 }
   0x2   :  { %855 = vmatprep.subr.bf16.mxu0 %v904_v0  ;;  %v907_v3 = vld [vmem:[%s1225_s1 + $0x20] sm:$0xff]   ;;  %v908_v5 = vld [vmem:[%s1225_s1 + $0x18] sm:$0xff]   ;;  %v909_v6 = vld [vmem:[%s1225_s1 + $0x10] sm:$0xff]  }
   0x3   :  { %856 = vmatpush3.bf16.msra.mxu0 %v904_v0  ;;  %v912_v4 = vld [vmem:[%s1226_s0] sm:$0xff]   ;;  %v922_v7 = vld [vmem:[%s1227_s3 + $0x74] ss:$8 sps:$4 sm:$0xff]   ;;  %v920_v8 = vld [vmem:[%s1227_s3 + $0x70] ss:$8 sps:$4 sm:$0xff]  }
   0x4   :  { %857 = vmatprep.subr.bf16.mxu0 %v905_v1  ;;  %871 = vmatprep.mubr.bf16.mxu0 %v912_v4  ;;  %v925_v9 = vld [vmem:[%s1227_s3 + $0x64] ss:$8 sps:$4 sm:$0xff]   ;;  %v923_v11 = vld [vmem:[%s1227_s3 + $0x60] ss:$8 sps:$4 sm:$0xff]   ;;  %v928_v12 = vld [vmem:[%s1227_s3 + $0x54] ss:$8 sps:$4 sm:$0xff]  }
   0x5   :  { %887 = vmatprep.subr.bf16.mxu1 %v922_v7  ;;  %v910_v10 = vld [vmem:[%s1225_s1 + $0x8] sm:$0xff]   ;;  %v911_v13 = vld [vmem:[%s1225_s1] sm:$0xff]   ;;  %v926_v14 = vld [vmem:[%s1227_s3 + $0x50] ss:$8 sps:$4 sm:$0xff]  }
   0x6   :  { %895 = vmatpush1.bf16.msra.mxu1 %v920_v8  ;;  %v931_v15 = vld [vmem:[%s1227_s3 + $0x44] ss:$8 sps:$4 sm:$0xff]   ;;  %v929_v17 = vld [vmem:[%s1227_s3 + $0x40] ss:$8 sps:$4 sm:$0xff]   ;;  %v914_v18 = vld [vmem:[%s1226_s0 + $0x10] sm:$0xff]  }
   0x7   :  { %858 = vmatpush3.bf16.msra.mxu0 %v905_v1  ;;  %888 = vmatprep.subr.bf16.mxu1 %v925_v9  ;;  %v913_v16 = vld [vmem:[%s1226_s0 + $0x8] sm:$0xff]   ;;  %v934_v19 = vld [vmem:[%s1227_s3 + $0x34] ss:$8 sps:$4 sm:$0xff]   ;;  %v932_v20 = vld [vmem:[%s1227_s3 + $0x30] ss:$8 sps:$4 sm:$0xff]  }
   0x8   :  { %859 = vmatprep.subr.bf16.mxu0 %v906_v2  ;;  %v915_v21 = vld [vmem:[%s1226_s0 + $0x18] sm:$0xff]   ;;  %v916_v22 = vld [vmem:[%s1226_s0 + $0x20] sm:$0xff]   ;;  %v917_v23 = vld [vmem:[%s1226_s0 + $0x28] sm:$0xff]  }
   0x9   :  { %v918_v24 = vld [vmem:[%s1226_s0 + $0x30] sm:$0xff]   ;;  %v919_v25 = vld [vmem:[%s1226_s0 + $0x38] sm:$0xff]   ;;  %v937_v26 = vld [vmem:[%s1227_s3 + $0x24] ss:$8 sps:$4 sm:$0xff]  }
   0xa   :  { %896 = vmatpush1.bf16.msra.mxu1 %v923_v11  ;;  %v935_v27 = vld [vmem:[%s1227_s3 + $0x20] ss:$8 sps:$4 sm:$0xff]   ;;  %v940_v28 = vld [vmem:[%s1227_s3 + $0x14] ss:$8 sps:$4 sm:$0xff]   ;;  %v938_v29 = vld [vmem:[%s1227_s3 + $0x10] ss:$8 sps:$4 sm:$0xff]  }
   0xb   :  { %860 = vmatpush3.bf16.msra.mxu0 %v906_v2  ;;  %889 = vmatprep.subr.bf16.mxu1 %v928_v12  ;;  %v943_v30 = vld [vmem:[%s1227_s3 + $0x4] ss:$8 sps:$4 sm:$0xff]   ;;  %v941_v31 = vld [vmem:[%s1227_s3] ss:$8 sps:$4 sm:$0xff]   ;;  %v338_v41 = vld [vmem:[%s1228_s2 + $0x18] sm:$0xff] }
   0xc   :  { %861 = vmatprep.subr.bf16.mxu0 %v907_v3  ;;  %v335_v35 = vld [vmem:[%s1228_s2] sm:$0xff]  ;;  %v336_v37 = vld [vmem:[%s1228_s2 + $0x8] sm:$0xff]  ;;  %v337_v45 = vld [vmem:[%s1228_s2 + $0x10] sm:$0xff] }
   0xd   :  { %v339_v47 = vld [vmem:[%s1228_s2 + $0x20] sm:$0xff]  ;;  %v340_v51 = vld [vmem:[%s1228_s2 + $0x28] sm:$0xff]  ;;  %v342_v57 = vld [vmem:[%s1228_s2 + $0x38] sm:$0xff] }
   0xe   :  { %897 = vmatpush1.bf16.msra.mxu1 %v926_v14  ;;  %v341_v62 = vld [vmem:[%s1228_s2 + $0x30] sm:$0xff] }
   0xf   :  { %862 = vmatpush3.bf16.msra.mxu0 %v907_v3  ;;  %890 = vmatprep.subr.bf16.mxu1 %v931_v15 }
  0x10   :  { %863 = vmatprep.subr.bf16.mxu0 %v908_v5 }
  0x12   :  { %898 = vmatpush1.bf16.msra.mxu1 %v929_v17 }
  0x13   :  { %864 = vmatpush3.bf16.msra.mxu0 %v908_v5  ;;  %891 = vmatprep.subr.bf16.mxu1 %v934_v19 }
  0x14   :  { %865 = vmatprep.subr.bf16.mxu0 %v909_v6 }
  0x16   :  { %899 = vmatpush1.bf16.msra.mxu1 %v932_v20 }
  0x17   :  { %866 = vmatpush3.bf16.msra.mxu0 %v909_v6  ;;  %892 = vmatprep.subr.bf16.mxu1 %v937_v26  ;;  %v343_v6 = vld [vmem:[%s1228_s2 + $0x40] sm:$0xff] }
  0x18   :  { %867 = vmatprep.subr.bf16.mxu0 %v910_v10 }
  0x1a   :  { %900 = vmatpush1.bf16.msra.mxu1 %v935_v27 }
  0x1b   :  { %868 = vmatpush3.bf16.msra.mxu0 %v910_v10  ;;  %893 = vmatprep.subr.bf16.mxu1 %v940_v28 }
  0x1c   :  { %869 = vmatprep.subr.bf16.mxu0 %v911_v13 }
  0x1e   :  { %901 = vmatpush1.bf16.msra.mxu1 %v938_v29 }
  0x1f   :  { %870 = vmatpush3.bf16.msra.mxu0 %v911_v13  ;;  %894 = vmatprep.subr.bf16.mxu1 %v943_v30 }
  0x20   :  { %487 = vmatprep.subr.bf16.mxu0 %v922_v7 }
  0x22   :  { %872 = vmatmul.mubr.bf16.vlgmr.msra.gmra.mxu0 %v913_v16  ;;  %902 = vmatpush1.bf16.msra.mxu1 %v941_v31  ;;  %v345_v16 = vld [vmem:[%s1228_s2 + $0x50] sm:$0xff] }
  0x23   :  { %875 = vmatprep.mubr.bf16.mxu0 %v914_v18  ;;  %488 = vmatpush1.bf16.msra.mxu0 %v920_v8  ;;  %v344_v8 = vld [vmem:[%s1228_s2 + $0x48] sm:$0xff] }
  0x24   :  { %489 = vmatprep.subr.bf16.mxu0 %v925_v9 }
  0x27   :  { %490 = vmatpush1.bf16.msra.mxu0 %v923_v11 }
  0x28   :  { %491 = vmatprep.subr.bf16.mxu0 %v928_v12 }
  0x2a   :  { %876 = vmatmul.mubr.bf16.gmra.mxu0 %v915_v21 }
  0x2b   :  { %879 = vmatprep.mubr.bf16.mxu0 %v916_v22  ;;  %492 = vmatpush1.bf16.msra.mxu0 %v926_v14 }
  0x2c   :  { %493 = vmatprep.subr.bf16.mxu0 %v931_v15 }
  0x2f   :  { %494 = vmatpush1.bf16.msra.mxu0 %v929_v17  ;;  %v346_v17 = vld [vmem:[%s1228_s2 + $0x58] sm:$0xff] }
  0x30   :  { %495 = vmatprep.subr.bf16.mxu0 %v934_v19 }
  0x32   :  { %880 = vmatmul.mubr.bf16.gmra.mxu0 %v917_v23 }
  0x33   :  { %883 = vmatprep.mubr.bf16.mxu0 %v918_v24  ;;  %496 = vmatpush1.bf16.msra.mxu0 %v932_v20 }
  0x34   :  { %497 = vmatprep.subr.bf16.mxu0 %v937_v26 }
  0x37   :  { %498 = vmatpush1.bf16.msra.mxu0 %v935_v27  ;;  %v348_v27 = vld [vmem:[%s1228_s2 + $0x68] sm:$0xff] }
  0x38   :  { %499 = vmatprep.subr.bf16.mxu0 %v940_v28 }
  0x3a   :  { %884 = vmatmul.mubr.bf16.gmra.mxu0 %v919_v25  ;;  %v347_v25 = vld [vmem:[%s1228_s2 + $0x60] sm:$0xff] }
  0x3b   :  { %500 = vmatpush1.bf16.msra.mxu0 %v938_v29  ;;  %519 = vmatprep.mubr.bf16.mxu0 %v944_v32 }
  0x3c   :  { %501 = vmatprep.subr.bf16.mxu0 %v943_v30 }
  0x3f   :  { %502 = vmatpush1.bf16.msra.mxu0 %v941_v31 }
  0xe2   :  { %v873_v33 = vpop.f32.mrf.mxu0 }
  0xe3   :  { %v353_v52 = vadd.f32 %v873_v33, %v337_v45 }
  0xe4   :  { %v221_v34 = vpop.f32.mrf.mxu0 }
  0xe5   :  { %v351_v38 = vadd.f32 %v335_v35, %v221_v34  ;;  %v369_v59 = vmax.f32 %v353_v52, 0.0  ;;  %v349_v34 = vld [vmem:[%s1228_s2 + $0x70] sm:$0xff]  ;;  %v350_v35 = vld [vmem:[%s1228_s2 + $0x78] sm:$0xff] }
  0xe6   :  { %v874_v36 = vpop.f32.mrf.mxu0 }
  0xe7   :  { %v367_v43 = vmax.f32 %v351_v38, 0.0  ;;  %v354_v48 = vadd.f32 %v874_v36, %v338_v41 }
  0xe8   :  { %v224_v39 = vpop.f32.mrf.mxu0 }
  0xe9   :  { %v352_v40 = vadd.f32 %v336_v37, %v224_v39  ;;  %v370_v55 = vmax.f32 %v354_v48, 0.0 }
  0xea   :  { %v877_v42 = vpop.f32.mrf.mxu0 }
  0xeb   :  { %v368_v44 = vmax.f32 %v352_v40, 0.0  ;;  %v384_v0 = vpack.c.bf16 %v370_v55, %v369_v59  ;;  %v357_v4 = vadd.f32 %v877_v42, %v341_v62 }
  0xec   :  { %v237_v46 = vpop.f32.mrf.mxu0 }
  0xed   :  { %v383_v49 = vpack.c.bf16 %v368_v44, %v367_v43  ;;  %v355_v53 = vadd.f32 %v339_v47, %v237_v46  ;;  %v373_v9 = vmax.f32 %v357_v4, 0.0  ;;  %v1135_v43 = vld [vmem:[%s1229_s4] ss:$0 sm:$0xff] }
  0xee   :  { %v878_v50 = vpop.f32.mrf.mxu0 }
  0xef   :  { %520 = vmatmul.mubr.bf16.vlgmr.msra.gmra.mxu0 %v383_v49  ;;  %v371_v60 = vmax.f32 %v355_v53, 0.0  ;;  %v358_v1 = vadd.f32 %v878_v50, %v342_v57 }
  0xf0   :  { %v240_v54 = vpop.f32.mrf.mxu0  ;;  %529 = vmatprep.mubr.bf16.mxu0 %v944_v32 }
  0xf1   :  { %v356_v56 = vadd.f32 %v340_v51, %v240_v54  ;;  %v374_v5 = vmax.f32 %v358_v1, 0.0 }
  0xf2   :  { %v881_v58 = vpop.f32.mrf.mxu0 }
  0xf3   :  { %v372_v61 = vmax.f32 %v356_v56, 0.0  ;;  %v386_v10 = vpack.c.bf16 %v374_v5, %v373_v9  ;;  %v361_v19 = vadd.f32 %v881_v58, %v345_v16 }
  0xf4   :  { %v253_v63 = vpop.f32.mrf.mxu0 }
  0xf5   :  { %v385_v2 = vpack.c.bf16 %v372_v61, %v371_v60  ;;  %v359_v11 = vadd.f32 %v343_v6, %v253_v63  ;;  %v377_v23 = vmax.f32 %v361_v19, 0.0 }
  0xf6   :  { %v882_v3 = vpop.f32.mrf.mxu0 }
  0xf7   :  { %530 = vmatmul.mubr.bf16.gmra.mxu0 %v384_v0  ;;  %540 = vmatmul.mubr.bf16.vlgmr.msra.gmra.mxu1 %v385_v2  ;;  %v375_v14 = vmax.f32 %v359_v11, 0.0  ;;  %v362_v20 = vadd.f32 %v882_v3, %v346_v17 }
  0xf8   :  { %549 = vmatprep.mubr.bf16.mxu1 %v944_v32  ;;  %v256_v7 = vpop.f32.mrf.mxu0 }
  0xf9   :  { %v360_v12 = vadd.f32 %v344_v8, %v256_v7  ;;  %v378_v24 = vmax.f32 %v362_v20, 0.0 }
  0xfa   :  { %v885_v13 = vpop.f32.mrf.mxu0 }
  0xfb   :  { %v376_v15 = vmax.f32 %v360_v12, 0.0  ;;  %v388_v28 = vpack.c.bf16 %v378_v24, %v377_v23  ;;  %v365_v36 = vadd.f32 %v885_v13, %v349_v34 }
  0xfc   :  { %v269_v18 = vpop.f32.mrf.mxu0 }
  0xfd   :  { %v387_v21 = vpack.c.bf16 %v376_v15, %v375_v14  ;;  %v363_v29 = vadd.f32 %v347_v25, %v269_v18  ;;  %v381_v39 = vmax.f32 %v365_v36, 0.0 }
  0xfe   :  { %v886_v22 = vpop.f32.mrf.mxu0 }
  0xff   :  { %550 = vmatmul.mubr.bf16.gmra.mxu1 %v386_v10  ;;  %v379_v31 = vmax.f32 %v363_v29, 0.0  ;;  %v366_v37 = vadd.f32 %v886_v22, %v350_v35 }
 0x100   :  { %559 = vmatprep.mubr.bf16.mxu1 %v944_v32  ;;  %v272_v26 = vpop.f32.mrf.mxu0 }
 0x101   :  { %v364_v30 = vadd.f32 %v348_v27, %v272_v26  ;;  %v382_v40 = vmax.f32 %v366_v37, 0.0 }
 0x103   :  { %v380_v33 = vmax.f32 %v364_v30, 0.0  ;;  %v390_v41 = vpack.c.bf16 %v382_v40, %v381_v39 }
 0x105   :  { %v389_v38 = vpack.c.bf16 %v380_v33, %v379_v31 }
 0x107   :  { %560 = vmatmul.mubr.bf16.gmra.mxu1 %v387_v21 }
 0x108   :  { %569 = vmatprep.mubr.bf16.mxu1 %v944_v32 }
 0x10f   :  { %570 = vmatmul.mubr.bf16.gmra.mxu1 %v388_v28 }
 0x110   :  { %579 = vmatprep.mubr.bf16.mxu1 %v944_v32 }
 0x117   :  { %580 = vmatmul.mubr.bf16.gmra.mxu1 %v389_v38 }
 0x118   :  { %589 = vmatprep.mubr.bf16.mxu1 %v944_v32 }
 0x11f   :  { %590 = vmatmul.mubr.bf16.gmra.mxu1 %v390_v41 }
 0x1af   :  { %v521_v42 = vpop.f32.mrf.mxu0 }
 0x1b1   :  { %v523_v44 = vpop.f32.mrf.mxu0 }
 0x1b2   :  { %v687_v45 = vadd.f32 %v1135_v43, %v523_v44 }
 0x1b3   :  { %v525_v46 = vpop.f32.mrf.mxu0 }
 0x1b4   :  { %703 = vst [vmem:[%s1230_s6] sm:$0xff] %v687_v45  ;;  %v795_v47 = vpack.c.bf16 %v525_v46, %v521_v42 }
 0x1b5   :  { %v527_v32 = vpop.f32.mrf.mxu0 }
 0x1b6   :  { %796 = vst [vmem:[%s1231_s5] sm:$0xff] %v795_v47   ;;  %v688_v48 = vadd.f32 %v1135_v43, %v527_v32 }
 0x1b7   :  { %v531_v49 = vpop.f32.mrf.mxu0  ;;  %v541_v50 = vpop.f32.mrf.mxu1 }
 0x1b8   :  { %704 = vst [vmem:[%s1230_s6 + $0x8] sm:$0xff] %v688_v48 }
 0x1b9   :  { %v533_v51 = vpop.f32.mrf.mxu0  ;;  %v543_v52 = vpop.f32.mrf.mxu1 }
 0x1ba   :  { %v689_v53 = vadd.f32 %v1135_v43, %v533_v51  ;;  %v691_v54 = vadd.f32 %v1135_v43, %v543_v52 }
 0x1bb   :  { %v535_v55 = vpop.f32.mrf.mxu0  ;;  %v545_v56 = vpop.f32.mrf.mxu1 }
 0x1bc   :  { %705 = vst [vmem:[%s1230_s6 + $0x10] sm:$0xff] %v689_v53  ;;  %707 = vst [vmem:[%s1230_s6 + $0x20] sm:$0xff] %v691_v54  ;;  %v800_v57 = vpack.c.bf16 %v535_v55, %v531_v49  ;;  %v805_v58 = vpack.c.bf16 %v545_v56, %v541_v50 }
 0x1bd   :  { %v537_v59 = vpop.f32.mrf.mxu0  ;;  %v547_v60 = vpop.f32.mrf.mxu1 }
 0x1be   :  { %832 = vst [vmem:[%s1231_s5 + $0x8] sm:$0xff] %v800_v57   ;;  %833 = vst [vmem:[%s1231_s5 + $0x10] sm:$0xff] %v805_v58   ;;  %v690_v61 = vadd.f32 %v1135_v43, %v537_v59  ;;  %v692_v62 = vadd.f32 %v1135_v43, %v547_v60 }
 0x1bf   :  { %v551_v63 = vpop.f32.mrf.mxu1 }
 0x1c0   :  { %706 = vst [vmem:[%s1230_s6 + $0x18] sm:$0xff] %v690_v61  ;;  %708 = vst [vmem:[%s1230_s6 + $0x28] sm:$0xff] %v692_v62 }
 0x1c1   :  { %v553_v0 = vpop.f32.mrf.mxu1 }
 0x1c2   :  { %v693_v1 = vadd.f32 %v1135_v43, %v553_v0 }
 0x1c3   :  { %v555_v2 = vpop.f32.mrf.mxu1 }
 0x1c4   :  { %709 = vst [vmem:[%s1230_s6 + $0x30] sm:$0xff] %v693_v1  ;;  %v810_v3 = vpack.c.bf16 %v555_v2, %v551_v63 }
 0x1c5   :  { %v557_v4 = vpop.f32.mrf.mxu1 }
 0x1c6   :  { %834 = vst [vmem:[%s1231_s5 + $0x18] sm:$0xff] %v810_v3   ;;  %v694_v5 = vadd.f32 %v1135_v43, %v557_v4 }
 0x1c7   :  { %v561_v6 = vpop.f32.mrf.mxu1 }
 0x1c8   :  { %710 = vst [vmem:[%s1230_s6 + $0x38] sm:$0xff] %v694_v5 }
 0x1c9   :  { %v563_v7 = vpop.f32.mrf.mxu1 }
 0x1ca   :  { %v695_v8 = vadd.f32 %v1135_v43, %v563_v7 }
 0x1cb   :  { %v565_v9 = vpop.f32.mrf.mxu1 }
 0x1cc   :  { %711 = vst [vmem:[%s1230_s6 + $0x40] sm:$0xff] %v695_v8  ;;  %v815_v10 = vpack.c.bf16 %v565_v9, %v561_v6 }
 0x1cd   :  { %v567_v11 = vpop.f32.mrf.mxu1 }
 0x1ce   :  { %835 = vst [vmem:[%s1231_s5 + $0x20] sm:$0xff] %v815_v10   ;;  %v696_v12 = vadd.f32 %v1135_v43, %v567_v11 }
 0x1cf   :  { %v571_v13 = vpop.f32.mrf.mxu1 }
 0x1d0   :  { %712 = vst [vmem:[%s1230_s6 + $0x48] sm:$0xff] %v696_v12 }
 0x1d1   :  { %v573_v14 = vpop.f32.mrf.mxu1 }
 0x1d2   :  { %v697_v15 = vadd.f32 %v1135_v43, %v573_v14 }
 0x1d3   :  { %v575_v16 = vpop.f32.mrf.mxu1 }
 0x1d4   :  { %713 = vst [vmem:[%s1230_s6 + $0x50] sm:$0xff] %v697_v15  ;;  %v820_v17 = vpack.c.bf16 %v575_v16, %v571_v13 }
 0x1d5   :  { %v577_v18 = vpop.f32.mrf.mxu1 }
 0x1d6   :  { %836 = vst [vmem:[%s1231_s5 + $0x28] sm:$0xff] %v820_v17   ;;  %v698_v19 = vadd.f32 %v1135_v43, %v577_v18 }
 0x1d7   :  { %v581_v20 = vpop.f32.mrf.mxu1 }
 0x1d8   :  { %714 = vst [vmem:[%s1230_s6 + $0x58] sm:$0xff] %v698_v19 }
 0x1d9   :  { %v583_v21 = vpop.f32.mrf.mxu1 }
 0x1da   :  { %v699_v22 = vadd.f32 %v1135_v43, %v583_v21 }
 0x1db   :  { %v585_v23 = vpop.f32.mrf.mxu1 }
 0x1dc   :  { %715 = vst [vmem:[%s1230_s6 + $0x60] sm:$0xff] %v699_v22  ;;  %v825_v24 = vpack.c.bf16 %v585_v23, %v581_v20 }
 0x1dd   :  { %v587_v25 = vpop.f32.mrf.mxu1 }
 0x1de   :  { %837 = vst [vmem:[%s1231_s5 + $0x30] sm:$0xff] %v825_v24   ;;  %v700_v26 = vadd.f32 %v1135_v43, %v587_v25 }
 0x1df   :  { %v591_v27 = vpop.f32.mrf.mxu1 }
 0x1e0   :  { %716 = vst [vmem:[%s1230_s6 + $0x68] sm:$0xff] %v700_v26 }
 0x1e1   :  { %v593_v28 = vpop.f32.mrf.mxu1 }
 0x1e2   :  { %v701_v29 = vadd.f32 %v1135_v43, %v593_v28 }
 0x1e3   :  { %v595_v30 = vpop.f32.mrf.mxu1 }
 0x1e4   :  { %717 = vst [vmem:[%s1230_s6 + $0x70] sm:$0xff] %v701_v29  ;;  %v830_v31 = vpack.c.bf16 %v595_v30, %v591_v27 }
 0x1e5   :  { %v597_v33 = vpop.f32.mrf.mxu1 }
 0x1e6   :  { %838 = vst [vmem:[%s1231_s5 + $0x38] sm:$0xff] %v830_v31   ;;  %v702_v34 = vadd.f32 %v1135_v43, %v597_v33 }
 0x1e8   :  { %718 = vst [vmem:[%s1230_s6 + $0x78] sm:$0xff] %v702_v34 }

</bundles_post_ra>
